<compile_context>
chip_gen: v5e
topology: v5e:2x2
jax: 0.10.0
libtpu: 0.0.40
codegen_flags: <defaults>
</compile_context>

<pallas_src>
import functools

import jax
import jax.numpy as jnp
from jax.experimental import pallas as pl
from jax.experimental.pallas import tpu as pltpu


def _round_up(x, m):
    return ((x + m - 1) // m) * m


# Tile caps. 2304 keeps every conv's K axis a single grid step and divides
# fc0's K = 9216 exactly (4 steps, zero padding waste).
_TK_CAP = 2304
_TN_CAP = 512


def _select_kn(K, N):
    """Tile sizes / padded extents for the (K, N) weight matrix.

    Idempotent: feeding back the padded (Kp, Np) returns the same tiles, so the
    one-time weight prep and the per-call matmul wrapper always agree.
    """
    Kp128 = _round_up(K, 128)
    nk = -(-Kp128 // _TK_CAP)
    tk = _round_up(-(-Kp128 // nk), 128)
    Kp = tk * nk
    Np128 = _round_up(N, 128)
    tn = min(_TN_CAP, Np128)
    if Np128 // tn < 2 and Np128 >= 256:
        tn = 128  # keep >=2 parallel N tiles so both v7x TensorCores get work
    Np = _round_up(Np128, tn)
    return tk, tn, Kp, Np


# ----------------------------------------------------------------------------
# Pallas kernel: tiled matmul, accumulate in the resident f32 output block,
# fused bias (+ ReLU) on the last K step.
# ----------------------------------------------------------------------------
def _matmul_bias_kernel(a_ref, b_ref, bias_ref, o_ref, *, relu):
    @pl.when(pl.program_id(2) == 0)
    def _():
        o_ref[...] = jnp.zeros_like(o_ref)

    o_ref[...] += jnp.dot(a_ref[...], b_ref[...],
                          preferred_element_type=jnp.float32)

    @pl.when(pl.program_id(2) == pl.num_programs(2) - 1)
    def _():
        out = o_ref[...] + bias_ref[...]
        if relu:
            out = jnp.maximum(out, 0.0)
        o_ref[...] = out


def matmul_bias_act(a, b_p, bias_p, n_out, relu):
    """act(a @ b + bias) with a Pallas TPU kernel.

    a:      (M, K)  activations (any float dtype; cast to bf16 here).
    b_p:    (Kp, Np) bf16 weights, already padded to tile multiples by prep.
    bias_p: (1, Np)  f32 bias, already padded.
    Returns (M, n_out) f32.
    """
    M, K = a.shape
    Kp, Np = b_p.shape
    tk, tn, Kp2, Np2 = _select_kn(Kp, Np)
    assert Kp2 == Kp and Np2 == Np, "weight padding does not match tile plan"
    assert K <= Kp

    tm = min(128, _round_up(M, 8))
    Mp = _round_up(M, tm)
    a = a.astype(jnp.bfloat16)
    if Mp != M or Kp != K:
        a = jnp.pad(a, ((0, Mp - M), (0, Kp - K)))

    grid = (Mp // tm, Np // tn, Kp // tk)
    out = pl.pallas_call(
        functools.partial(_matmul_bias_kernel, relu=relu),
        out_shape=jax.ShapeDtypeStruct((Mp, Np), jnp.float32),
        grid_spec=pltpu.PrefetchScalarGridSpec(
            num_scalar_prefetch=0,
            grid=grid,
            in_specs=[
                pl.BlockSpec((tm, tk), lambda i, j, k: (i, k)),
                pl.BlockSpec((tk, tn), lambda i, j, k: (k, j)),
                pl.BlockSpec((1, tn), lambda i, j, k: (0, j)),
            ],
            out_specs=pl.BlockSpec((tm, tn), lambda i, j, k: (i, j)),
        ),
        compiler_params=pltpu.CompilerParams(
            dimension_semantics=("parallel", "parallel", "arbitrary")),
    )(a, b_p, bias_p)
    return out[:M, :n_out]


# ----------------------------------------------------------------------------
# NHWC glue: im2col, conv, maxpool, adaptive avg pool
# ----------------------------------------------------------------------------
def im2col_nhwc(x, kh, kw, stride, pad):
    """NHWC input -> (N*Ho*Wo, kh*kw*C) patches in (kh, kw, C) column order."""
    N, H, W, C = x.shape
    xp = jnp.pad(x, ((0, 0), (pad, pad), (pad, pad), (0, 0)))
    Ho = (H + 2 * pad - kh) // stride + 1
    Wo = (W + 2 * pad - kw) // stride + 1
    cols = []
    for i in range(kh):
        for j in range(kw):
            cols.append(xp[:, i:i + stride * (Ho - 1) + 1:stride,
                           j:j + stride * (Wo - 1) + 1:stride, :])  # (N,Ho,Wo,C)
    patches = jnp.concatenate(cols, axis=-1)         # (N, Ho, Wo, kh*kw*C)
    return patches.reshape(N * Ho * Wo, kh * kw * C), Ho, Wo


def conv2d_relu(x, w_p, b_p, out_ch, k, stride, pad):
    """Conv2d + ReLU, NHWC activations; w_p is the prepped (Kp, Np) bf16 matrix."""
    N = x.shape[0]
    patches, Ho, Wo = im2col_nhwc(x, k, k, stride, pad)
    out = matmul_bias_act(patches, w_p, b_p, out_ch, relu=True)  # (N*Ho*Wo, O)
    return out.reshape(N, Ho, Wo, out_ch)


def maxpool_3x3_s2(x):
    """MaxPool2d(kernel_size=3, stride=2), NHWC. Plain XLA elementwise max over
    the 9 strided windows (fuses; no 9x HBM expansion, no extra kernel launch)."""
    N, H, W, C = x.shape
    Ho = (H - 3) // 2 + 1
    Wo = (W - 3) // 2 + 1
    out = None
    for i in range(3):
        for j in range(3):
            win = x[:, i:i + 2 * (Ho - 1) + 1:2, j:j + 2 * (Wo - 1) + 1:2, :]
            out = win if out is None else jnp.maximum(out, win)
    return out


def adaptive_avg_pool_6x6(x):
    """torch.nn.AdaptiveAvgPool2d((6, 6)) semantics, NHWC input -> (N, 6, 6, C)."""
    N, H, W, C = x.shape
    rows = []
    for i in range(6):
        h0, h1 = (i * H) // 6, -(-((i + 1) * H) // 6)
        cols = []
        for j in range(6):
            w0, w1 = (j * W) // 6, -(-((j + 1) * W) // 6)
            cols.append(jnp.mean(x[:, h0:h1, w0:w1, :], axis=(1, 2)))  # (N, C)
        rows.append(jnp.stack(cols, axis=1))          # (N, 6, C)
    return jnp.stack(rows, axis=1)                    # (N, 6, 6, C)


# ----------------------------------------------------------------------------
# Parameters: PyTorch-layout init + one-time prep (reshape/permute/pad/bf16)
# ----------------------------------------------------------------------------
_CONV_SHAPES = [
    (64, 1, 11, 11),
    (192, 64, 5, 5),
    (384, 192, 3, 3),
    (256, 384, 3, 3),
    (256, 256, 3, 3),
]


def init_params(key, num_classes=10):
    fc_shapes = [(4096, 256 * 6 * 6), (4096, 4096), (num_classes, 4096)]
    params = {}
    keys = jax.random.split(key, len(_CONV_SHAPES) + len(fc_shapes))
    for idx, shp in enumerate(_CONV_SHAPES):
        fan_in = shp[1] * shp[2] * shp[3]
        params[f"conv{idx}_w"] = (jax.random.normal(keys[idx], shp, jnp.float32)
                                  / jnp.sqrt(fan_in))
        params[f"conv{idx}_b"] = jnp.zeros((shp[0],), jnp.float32)
    for idx, shp in enumerate(fc_shapes):
        k = keys[len(_CONV_SHAPES) + idx]
        params[f"fc{idx}_w"] = (jax.random.normal(k, shp, jnp.float32)
                                / jnp.sqrt(shp[1]))
        params[f"fc{idx}_b"] = jnp.zeros((shp[0],), jnp.float32)
    return params


def _pad_kn(w2d, b):
    """Pad (K, N) weight and (N,) bias to the tile plan; weight -> bf16."""
    K, N = w2d.shape
    _, _, Kp, Np = _select_kn(K, N)
    w_p = jnp.pad(w2d, ((0, Kp - K), (0, Np - N))).astype(jnp.bfloat16)
    b_p = jnp.pad(b.reshape(1, -1), ((0, 0), (0, Np - N))).astype(jnp.float32)
    return w_p, b_p


def prepare_params(params, num_classes=10):
    """One-time weight prep: (K, N) layout matched to NHWC patches, padded, bf16."""
    prepped = {}
    for idx, (O, C, kh, kw) in enumerate(_CONV_SHAPES):
        w = params[f"conv{idx}_w"]                           # (O, C, kh, kw)
        w2d = jnp.transpose(w, (2, 3, 1, 0)).reshape(kh * kw * C, O)
        prepped[f"conv{idx}_w"], prepped[f"conv{idx}_b"] = _pad_kn(
            w2d, params[f"conv{idx}_b"])
    # fc0: permute columns from PyTorch's (C, 6, 6) flatten to our NHWC (6, 6, C)
    # flatten, then pre-transpose to (K, N).
    w0 = params["fc0_w"].reshape(4096, 256, 6, 6)
    w0 = jnp.transpose(w0, (0, 2, 3, 1)).reshape(4096, 256 * 6 * 6).T
    prepped["fc0_w"], prepped["fc0_b"] = _pad_kn(w0, params["fc0_b"])
    prepped["fc1_w"], prepped["fc1_b"] = _pad_kn(params["fc1_w"].T,
                                                 params["fc1_b"])
    prepped["fc2_w"], prepped["fc2_b"] = _pad_kn(params["fc2_w"].T,
                                                 params["fc2_b"])
    return prepped


# ----------------------------------------------------------------------------
# AlexNet forward
# ----------------------------------------------------------------------------
def alexnet_forward(params, x, num_classes=10):
    # NCHW (module boundary, matches PyTorch) -> NHWC once for the feature stack.
    x = jnp.transpose(x, (0, 2, 3, 1))
    # features
    x = conv2d_relu(x, params["conv0_w"], params["conv0_b"], 64, 11, 4, 2)
    x = maxpool_3x3_s2(x)
    x = conv2d_relu(x, params["conv1_w"], params["conv1_b"], 192, 5, 1, 2)
    x = maxpool_3x3_s2(x)
    x = conv2d_relu(x, params["conv2_w"], params["conv2_b"], 384, 3, 1, 1)
    x = conv2d_relu(x, params["conv3_w"], params["conv3_b"], 256, 3, 1, 1)
    x = conv2d_relu(x, params["conv4_w"], params["conv4_b"], 256, 3, 1, 1)
    x = maxpool_3x3_s2(x)
    # avgpool + flatten (NHWC flatten; fc0 weight columns were permuted to match)
    x = adaptive_avg_pool_6x6(x)
    x = x.reshape(x.shape[0], -1)                     # (N, 6*6*256)
    # classifier (Dropout == identity in eval mode)
    x = matmul_bias_act(x, params["fc0_w"], params["fc0_b"], 4096, relu=True)
    x = matmul_bias_act(x, params["fc1_w"], params["fc1_b"], 4096, relu=True)
    x = matmul_bias_act(x, params["fc2_w"], params["fc2_b"], num_classes,
                        relu=False)
    return x


if __name__ == "__main__":
    key = jax.random.PRNGKey(0)
    pkey, xkey = jax.random.split(key)
    raw_params = init_params(pkey, num_classes=10)
    params = prepare_params(raw_params, num_classes=10)
    # Single-channel input; 64x64 is the small end of what the feature stack
    # supports (final feature map 1x1 -> AdaptiveAvgPool2d replicates to 6x6).
    x = jax.random.normal(xkey, (2, 1, 64, 64), jnp.float32)

    logits = alexnet_forward(params, x, num_classes=10)
    jax.block_until_ready(logits)
    assert logits.shape == (2, 10), logits.shape
    print("KERNEL_OK")
</pallas_src>

<mosaic_0001>
module attributes {stable_mosaic.version = 11 : i64} {
  func.func @_matmul_bias_kernel(%arg0: i32, %arg1: i32, %arg2: i32, %arg3: memref<128x128xbf16, #tpu.memory_space<vmem>>, %arg4: memref<128x128xbf16, #tpu.memory_space<vmem>>, %arg5: memref<1x128xf32, #tpu.memory_space<vmem>>, %arg6: memref<128x128xf32, #tpu.memory_space<vmem>>) attributes {dimension_semantics = [#tpu.dimension_semantics<parallel>, #tpu.dimension_semantics<parallel>, #tpu.dimension_semantics<arbitrary>], iteration_bounds = array<i64: 4, 1, 1>, scalar_prefetch = 0 : i64, scratch_operands = 0 : i64, tpu.core_type = #tpu.core_type<tc>, window_params = [{transform_indices = @transform_0, window_bounds = array<i64: 128, 128>}, {transform_indices = @transform_1, window_bounds = array<i64: 128, 128>}, {transform_indices = @transform_2, window_bounds = array<i64: 1, 128>}, {transform_indices = @transform_3, window_bounds = array<i64: 128, 128>}]} {
    %c0_i32 = arith.constant 0 : i32
    %0 = arith.cmpi eq, %arg2, %c0_i32 : i32
    %1 = arith.extui %0 : i1 to i32
    %c0_i32_0 = arith.constant 0 : i32
    %2 = arith.cmpi ne, %1, %c0_i32_0 : i32
    scf.if %2 {
      %cst_10 = arith.constant 0.000000e+00 : f32
      %12 = vector.broadcast %cst_10 : f32 to vector<128x128xf32>
      %c0_11 = arith.constant 0 : index
      %c0_12 = arith.constant 0 : index
      %13 = vector.load %arg6[%c0_11, %c0_12] : memref<128x128xf32, #tpu.memory_space<vmem>>, vector<128x128xf32>
      tpu.vector_store %arg6[%c0_11, %c0_12], %12 {strides = array<i32>} : memref<128x128xf32, #tpu.memory_space<vmem>>, vector<128x128xf32>,
    } else {
    }
    %c0 = arith.constant 0 : index
    %c0_1 = arith.constant 0 : index
    %3 = vector.load %arg6[%c0, %c0_1] : memref<128x128xf32, #tpu.memory_space<vmem>>, vector<128x128xf32>
    %c0_2 = arith.constant 0 : index
    %c0_3 = arith.constant 0 : index
    %4 = vector.load %arg3[%c0_2, %c0_3] : memref<128x128xbf16, #tpu.memory_space<vmem>>, vector<128x128xbf16>
    %c0_4 = arith.constant 0 : index
    %c0_5 = arith.constant 0 : index
    %5 = vector.load %arg4[%c0_4, %c0_5] : memref<128x128xbf16, #tpu.memory_space<vmem>>, vector<128x128xbf16>
    %cst = arith.constant dense<0.000000e+00> : vector<128x128xf32>
    %6 = tpu.matmul %4, %5, %cst {dimension_numbers = #tpu.dot_dimension_numbers<[1], [0], [0], [1], [0, 0, 1, 1], [], []>} : vector<128x128xbf16>, vector<128x128xbf16>, vector<128x128xf32> -> vector<128x128xf32>
    %7 = arith.addf %3, %6 : vector<128x128xf32>
    %c0_6 = arith.constant 0 : index
    %c0_7 = arith.constant 0 : index
    %8 = vector.load %arg6[%c0_6, %c0_7] : memref<128x128xf32, #tpu.memory_space<vmem>>, vector<128x128xf32>
    tpu.vector_store %arg6[%c0_6, %c0_7], %7 {strides = array<i32>} : memref<128x128xf32, #tpu.memory_space<vmem>>, vector<128x128xf32>,
    %c0_i32_8 = arith.constant 0 : i32
    %9 = arith.cmpi eq, %arg2, %c0_i32_8 : i32
    %10 = arith.extui %9 : i1 to i32
    %c0_i32_9 = arith.constant 0 : i32
    %11 = arith.cmpi ne, %10, %c0_i32_9 : i32
    scf.if %11 {
      %c0_10 = arith.constant 0 : index
      %c0_11 = arith.constant 0 : index
      %12 = vector.load %arg6[%c0_10, %c0_11] : memref<128x128xf32, #tpu.memory_space<vmem>>, vector<128x128xf32>
      %c0_12 = arith.constant 0 : index
      %c0_13 = arith.constant 0 : index
      %13 = vector.load %arg5[%c0_12, %c0_13] : memref<1x128xf32, #tpu.memory_space<vmem>>, vector<1x128xf32>
      %14 = vector.broadcast %13 : vector<1x128xf32> to vector<128x128xf32>
      %15 = arith.addf %12, %14 : vector<128x128xf32>
      %cst_14 = arith.constant 0.000000e+00 : f32
      %16 = vector.broadcast %cst_14 : f32 to vector<128x128xf32>
      %17 = arith.maximumf %15, %16 : vector<128x128xf32>
      %c0_15 = arith.constant 0 : index
      %c0_16 = arith.constant 0 : index
      %18 = vector.load %arg6[%c0_15, %c0_16] : memref<128x128xf32, #tpu.memory_space<vmem>>, vector<128x128xf32>
      tpu.vector_store %arg6[%c0_15, %c0_16], %17 {strides = array<i32>} : memref<128x128xf32, #tpu.memory_space<vmem>>, vector<128x128xf32>,
    } else {
    }
    return
  }
  func.func @transform_0(%arg0: i32, %arg1: i32, %arg2: i32) -> (i32, i32) {
    %c0_i32 = arith.constant 0 : i32
    return %arg0, %arg2 : i32, i32
  }
  func.func @transform_1(%arg0: i32, %arg1: i32, %arg2: i32) -> (i32, i32) {
    %c0_i32 = arith.constant 0 : i32
    return %arg2, %arg1 : i32, i32
  }
  func.func @transform_2(%arg0: i32, %arg1: i32, %arg2: i32) -> (i32, i32) {
    %c0_i32 = arith.constant 0 : i32
    %c0_i32_0 = arith.constant 0 : i32
    return %c0_i32, %arg1 : i32, i32
  }
  func.func @transform_3(%arg0: i32, %arg1: i32, %arg2: i32) -> (i32, i32) {
    %c0_i32 = arith.constant 0 : i32
    return %arg0, %arg1 : i32, i32
  }
}

</mosaic_0001>

<bundles_post_ra>
// kernel: tpu_custom_call.1
= control target key start
LH: loop header
LB: loop body
LE: loop exit
PB: predicated region body
PF: predicated region fallthrough
CT: control target
= control target key end

     0   :  { %s1287_s0 = inlined_call_operand.hbm [shape: bf16[512,128], index: 0, kind: input, shape index: {}]   ;;  %s1288_s1 = inlined_call_operand.hbm [shape: bf16[128,128], index: 1, kind: input, shape index: {}]   ;;  %s1289_s2 = inlined_call_operand.vmem [shape: f32[1,128], index: 2, kind: input, shape index: {}]   ;;  %s1290_s3 = inlined_call_operand.hbm [shape: f32[512,128], index: 3, kind: output, shape index: {}]  }
   0x1   :  { %1292 = sst [smem:[#allocation11_spill]] %s1288_s1 }
   0x2   :  { %8 = vsyncpa [#allocation3], 0 }
   0x3   :  { %10 = vsyncpa [#allocation3 + $0x1], 0 }
   0x4   :  { %11 = vsyncpa [#allocation6], 0 }
   0x5   :  { %12 = vsyncpa [#allocation4], 0 }
   0x6   :  { %14 = vsyncpa [#allocation4 + $0x1], 0  ;;  %s1083_s12 = smov 0   ;;  %s1085_s13 = smov 0  }
   0x7   :  { %s1087_s14 = smov 0   ;;  %s1089_s15 = smov 0  }
   0x8   :  { %s1091_s16 = smov 0   ;;  %s1093_s17 = smov 0  }
   0x9 LB: > { %s707_s18 = sadd.s32 4294967295, %s1056_s17   ;;  %s708_s19 = sadd.s32 4294967294, %s1056_s17   ;;  %s1056_s17 = sphi %s1093_s17, %s20_s17   ;;  %s1052_s16 = sphi %s1091_s16, %s1306_s16   ;;  %s1048_s15 = sphi %s1089_s15, %s1305_s15   ;;  %s1044_s14 = sphi %s1087_s14, %s1304_s14   ;;  %s1040_s13 = sphi %s1085_s13, %s1303_s13   ;;  %s1036_s12 = sphi %s1083_s12, %s1302_s12  }
   0xa   : > { %p61_p0 = scmp.ne.s32.totalorder %s1040_s13, %s1036_s12  ;;  %p1117_p1 = scmp.eq.s32.totalorder %s707_s18, 0 }
   0xb   : > { %p1121_p2 = scmp.eq.s32.totalorder %s707_s18, 3  ;;  %p147_p3 = scmp.eq.s32.totalorder %s708_s19, 3 }
   0xc   : > { %p1127_p4 = por %p1117_p1, %p61_p0  ;;  %p709_p5 = scmp.ge.s32.totalorder %s1056_s17, 1 }
   0xd   : > { %p1132_p6 = por %p147_p3, %p61_p0  ;;  %p154_p7 = scmp.lt.s32.totalorder %s1056_s17, 5 }
   0xe   : > { %s1297_s1 = sld [smem:[#allocation11_spill]]  ;;  %s1058_s28 = smov [#allocation5]  }
   0xf   : > { %p1140_p8 = pnand %p709_p5, %p154_p7  ;;  %s171_s29 = sshll.u32 %s1058_s28, 4  ;;  %s172_s29 = int_to_ptr.vmem [resolvable:$true] %s171_s29 }
  0x10   : > { %s1291_s30 = smov 64   ;;  %s1060_s4 = smov 4  }
  0x11   : > { %p839_p9 = pneg %p1140_p8  ;;  %s39_s5 = sadd.s32 1, %s1052_s16 }
  0x12   : > { %p41_p11 = scmp.ge.s32.totalorder %s39_s5, 4  ;;  %s48_s6 = sadd.s32 1, %s1044_s14 }
  0x13   : > { %p840_p10 = pnand %p839_p9, %p1117_p1  ;;  %p55_p12 = scmp.ne.s32.totalorder %s1044_s14, %s1040_s13 }
  0x14   : > { %s169_s26 = sshll.u32 %s1297_s1, 4  ;;  %p56_p13 = scmp.eq.s32.totalorder %s1056_s17, 0  ;;  %s170_s26 = int_to_ptr.hbm [resolvable:$true] %s169_s26 }
  0x15   : > { %842 = dma.hbm_to_vmem [thread:$0]  (!%p840_p10), %s170_s26, 1024, %s172_s29, [#allocation6], %s1291_s30, %s1291_s30, %s1060_s4  }
  0x16   : > { %s1308_s5 = smov (%p41_p11, %s39_s5), 0  ;;  %p1158_p0 = por %p56_p13, %p55_p12 }
  0x17   : > { %p1164_p3 = por %p1121_p2, %p55_p12  ;;  %s43_s9 = ssub.s32 %s1052_s16, %s1308_s5 }
  0x18   : > { %p852_p5 = scmp.lt.s32.totalorder %s1056_s17, 4  ;;  %p46_p7 = scmp.eq.s32.totalorder %s43_s9, 0 }
  0x19   : > { %s191_s10 = sand.u32 1, %s1044_s14   ;;  %s789_s19 = sshll.u32 %s1052_s16, 6 }
  0x1a   : > { %s713_s11 = sshll.u32 %s191_s10, 6  ;;  %s201_s26 = scalar_lea.hbm %s1287_s0, %s789_s19 }
  0x1b   : > { %s1173_s18 = scalar_select %p46_p7, %s1044_s14, %s48_s6  }
  0x1c   : > { %s195_s28 = scalar_lea.vmem [#allocation2], %s713_s11  ;;  %s202_s21 = sshll.u32 %s201_s26, 4  ;;  %s203_s21 = int_to_ptr.hbm [resolvable:$true] %s202_s21 }
  0x1d   : > { %s204_s29 = sshll.u32 %s195_s28, 4  ;;  %p844_p2 = pnand %p852_p5, %p1158_p0  ;;  %s205_s29 = int_to_ptr.vmem [resolvable:$true] %s204_s29 }
  0x1e   : > { %s192_s30 = scalar_lea.sflag [#allocation3], %s191_s10  ;;  %s1301_s1 = smov 64  }
  0x1f   : > { %846 = dma.hbm_to_vmem [thread:$0]  (!%p844_p2), %s203_s21, 1024, %s205_s29, %s192_s30, %s1301_s1, %s1301_s1, %s1060_s4  }
  0x20   : > { %216 = sbr.rel (%p1140_p8) target bundleno = 238 (0xee), region = 32  ;;  %s1187_s6 = sand.u32 (!%p1140_p8), 1, %s1040_s13  }
  0x21   : > { %s717_s9 = sshll.u32 (!%p1140_p8), %s1187_s6, 6  ;;  %s219_s11 = scalar_lea.sflag (!%p1140_p8), [#allocation3], %s1187_s6 }
  0x22   : > { %s1191_s19 = scalar_lea.vmem (!%p1140_p8), [#allocation2], %s717_s9 }
  0x25   : > { %1023 = dma.done.wait (%p1127_p4), %s219_s11, 1024  }
  0x26   : > { %1025 = vsyncadd (%p1127_p4), %s219_s11, 4294966272 }
  0x27   : > { %1027 = dma.done.wait (%p1117_p1), [#allocation6], 1024  }
  0x28   : > { %1029 = vsyncadd (%p1117_p1), [#allocation6], 4294966272  ;;  %v805_v0 = vld [vmem:[#allocation5 + $0x38] sm:$0xff]  ;;  %v804_v1 = vld [vmem:[#allocation5 + $0x30] sm:$0xff]  ;;  %s719_s22 = sshll.u32 %s1187_s6, 7  ;;  %s806_s30 = sshll.u32 %s1048_s15, 7 }
  0x29   : > { %424 = vmatpush.bf16.msra.mxu0 %v805_v0  ;;  %807 = vmatpush.bf16.msra.mxu1 %v805_v0  ;;  %v803_v2 = vld [vmem:[#allocation5 + $0x28] sm:$0xff]  ;;  %v802_v3 = vld [vmem:[#allocation5 + $0x20] sm:$0xff]  ;;  %v801_v4 = vld [vmem:[#allocation5 + $0x18] sm:$0xff]  ;;  %s1217_s27 = scalar_lea.vmem [#allocation7], %s719_s22  ;;  %s589_s10 = scalar_lea.hbm %s1290_s3, %s806_s30 }
  0x2a   : > { %808 = vmatpush.bf16.msra.mxu2 %v805_v0  ;;  %809 = vmatpush.bf16.msra.mxu3 %v805_v0  ;;  %v800_v5 = vld [vmem:[#allocation5 + $0x10] sm:$0xff]  ;;  %v799_v6 = vld [vmem:[#allocation5 + $0x8] sm:$0xff]  ;;  %v798_v7 = vld [vmem:[#allocation5] sm:$0xff]  ;;  %s590_s24 = sshll.u32 %s1217_s27, 4  ;;  %s592_s15 = sshll.u32 %s589_s10, 4  ;;  %s591_s24 = int_to_ptr.vmem [resolvable:$true] %s590_s24  ;;  %s593_s15 = int_to_ptr.hbm [resolvable:$true] %s592_s15 }
  0x2b   : > { %v790_v8 = vld [vmem:[%s1191_s19] sm:$0xff]  ;;  %v792_v9 = vld [vmem:[%s1191_s19 + $0x10] sm:$0xff]  ;;  %v791_v12 = vld [vmem:[%s1191_s19 + $0x8] sm:$0xff]  ;;  %s577_s25 = scalar_lea.sflag [#allocation4], %s1187_s6  ;;  %s984_s26 = sshra.s32 %s593_s15, 4  ;;  %s985_s26 = int_to_ptr.hbm [resolvable:$true] %s984_s26 }
  0x2c   : > { %v794_v10 = vld [vmem:[%s1191_s19 + $0x20] sm:$0xff]  ;;  %v796_v11 = vld [vmem:[%s1191_s19 + $0x30] sm:$0xff]  ;;  %v793_v13 = vld [vmem:[%s1191_s19 + $0x18] sm:$0xff]  ;;  %s986_s28 = scalar_lea.hbm %s985_s26, 128  ;;  %s990_s9 = scalar_lea.hbm %s1290_s3, 512 }
  0x2d   : > { %425 = vmatpush.bf16.msra.mxu0 %v804_v1  ;;  %810 = vmatpush.bf16.msra.mxu1 %v804_v1  ;;  %v795_v14 = vld [vmem:[%s1191_s19 + $0x28] sm:$0xff]  ;;  %v797_v15 = vld [vmem:[%s1191_s19 + $0x38] sm:$0xff]  ;;  %v1212_v16 = vld [vmem:[%s1289_s2] ss:$0 sm:$0xff]  ;;  %p987_p1 = scmp.ne.s32.totalorder %s985_s26, %s986_s28  ;;  %p991_p9 = scmp.lt.s32.totalorder %s985_s26, %s1290_s3 }
  0x2e   : > { %811 = vmatpush.bf16.msra.mxu2 %v804_v1  ;;  %812 = vmatpush.bf16.msra.mxu3 %v804_v1  ;;  %p992_p10 = scmp.lt.s32.totalorder %s990_s9, %s986_s28 }
  0x2f   : > { %p988_p4 = pnand %p987_p1, %p1164_p3 }
  0x30   : > { %p993_p11 = por %p992_p10, %p991_p9 }
  0x31   : > { %426 = vmatpush.bf16.msra.mxu0 %v803_v2  ;;  %813 = vmatpush.bf16.msra.mxu1 %v803_v2  ;;  %p989_p8 = pneg %p988_p4 }
  0x32   : > { %814 = vmatpush.bf16.msra.mxu2 %v803_v2  ;;  %815 = vmatpush.bf16.msra.mxu3 %v803_v2 }
  0x33   : > { %p994_p12 = pnand %p993_p11, %p989_p8 }
  0x35   : > { %427 = vmatpush.bf16.msra.mxu0 %v802_v3  ;;  %816 = vmatpush.bf16.msra.mxu1 %v802_v3 }
  0x36   : > { %817 = vmatpush.bf16.msra.mxu2 %v802_v3  ;;  %818 = vmatpush.bf16.msra.mxu3 %v802_v3 }
  0x39   : > { %428 = vmatpush.bf16.msra.mxu0 %v801_v4  ;;  %819 = vmatpush.bf16.msra.mxu1 %v801_v4 }
  0x3a   : > { %820 = vmatpush.bf16.msra.mxu2 %v801_v4  ;;  %821 = vmatpush.bf16.msra.mxu3 %v801_v4 }
  0x3d   : > { %429 = vmatpush.bf16.msra.mxu0 %v800_v5  ;;  %822 = vmatpush.bf16.msra.mxu1 %v800_v5 }
  0x3e   : > { %823 = vmatpush.bf16.msra.mxu2 %v800_v5  ;;  %824 = vmatpush.bf16.msra.mxu3 %v800_v5 }
  0x41   : > { %430 = vmatpush.bf16.msra.mxu0 %v799_v6  ;;  %825 = vmatpush.bf16.msra.mxu1 %v799_v6 }
  0x42   : > { %826 = vmatpush.bf16.msra.mxu2 %v799_v6  ;;  %827 = vmatpush.bf16.msra.mxu3 %v799_v6 }
  0x45   : > { %431 = vmatpush.bf16.msra.mxu0 %v798_v7  ;;  %828 = vmatpush.bf16.msra.mxu1 %v798_v7 }
  0x46   : > { %829 = vmatpush.bf16.msra.mxu2 %v798_v7  ;;  %830 = vmatpush.bf16.msra.mxu3 %v798_v7 }
  0x48   : > { %432 = vmatmul.bf16.vlgmr.msra.gmra.mxu0 %v790_v8  ;;  %442 = vmatmul.bf16.vlgmr.msra.gmra.mxu1 %v792_v9 }
  0x49   : > { %452 = vmatmul.bf16.vlgmr.msra.gmra.mxu2 %v794_v10  ;;  %462 = vmatmul.bf16.vlgmr.msra.gmra.mxu3 %v796_v11 }
  0x58   : > { %437 = vmatmul.bf16.gmra.mxu0 %v791_v12  ;;  %447 = vmatmul.bf16.gmra.mxu1 %v793_v13 }
  0x59   : > { %457 = vmatmul.bf16.gmra.mxu2 %v795_v14  ;;  %467 = vmatmul.bf16.gmra.mxu3 %v797_v15 }
  0xc5   : > { %v433_v17 = vpop.f32.mrf.mxu0  ;;  %v443_v18 = vpop.f32.mrf.mxu1 }
  0xc6   : > { %v528_v19 = vadd.f32 %v1212_v16, %v433_v17  ;;  %v532_v20 = vadd.f32 %v1212_v16, %v443_v18 }
  0xc8   : > { %v544_v21 = vmax.f32 %v528_v19, 0.0  ;;  %v548_v22 = vmax.f32 %v532_v20, 0.0 }
  0xca   : > { %560 = vst [vmem:[%s1217_s27] sm:$0xff] %v544_v21 }
  0xcb   : > { %564 = vst [vmem:[%s1217_s27 + $0x20] sm:$0xff] %v548_v22 }
  0xcc   : > { %v453_v23 = vpop.f32.mrf.mxu2  ;;  %v463_v24 = vpop.f32.mrf.mxu3 }
  0xcd   : > { %v435_v25 = vpop.f32.mrf.mxu0  ;;  %v445_v26 = vpop.f32.mrf.mxu1  ;;  %v536_v27 = vadd.f32 %v1212_v16, %v453_v23  ;;  %v540_v28 = vadd.f32 %v1212_v16, %v463_v24 }
  0xce   : > { %v529_v29 = vadd.f32 %v1212_v16, %v435_v25  ;;  %v533_v30 = vadd.f32 %v1212_v16, %v445_v26 }
  0xcf   : > { %v552_v31 = vmax.f32 %v536_v27, 0.0  ;;  %v556_v32 = vmax.f32 %v540_v28, 0.0 }
  0xd0   : > { %v545_v33 = vmax.f32 %v529_v29, 0.0  ;;  %v549_v34 = vmax.f32 %v533_v30, 0.0 }
  0xd1   : > { %568 = vst [vmem:[%s1217_s27 + $0x40] sm:$0xff] %v552_v31 }
  0xd2   : > { %572 = vst [vmem:[%s1217_s27 + $0x60] sm:$0xff] %v556_v32 }
  0xd3   : > { %561 = vst [vmem:[%s1217_s27 + $0x8] sm:$0xff] %v545_v33 }
  0xd4   : > { %v455_v35 = vpop.f32.mrf.mxu2  ;;  %v465_v36 = vpop.f32.mrf.mxu3  ;;  %565 = vst [vmem:[%s1217_s27 + $0x28] sm:$0xff] %v549_v34 }
  0xd5   : > { %v438_v37 = vpop.f32.mrf.mxu0  ;;  %v448_v38 = vpop.f32.mrf.mxu1  ;;  %v537_v39 = vadd.f32 %v1212_v16, %v455_v35  ;;  %v541_v40 = vadd.f32 %v1212_v16, %v465_v36 }
  0xd6   : > { %v530_v41 = vadd.f32 %v1212_v16, %v438_v37  ;;  %v534_v42 = vadd.f32 %v1212_v16, %v448_v38 }
  0xd7   : > { %v553_v43 = vmax.f32 %v537_v39, 0.0  ;;  %v557_v44 = vmax.f32 %v541_v40, 0.0 }
  0xd8   : > { %v546_v45 = vmax.f32 %v530_v41, 0.0  ;;  %v550_v46 = vmax.f32 %v534_v42, 0.0 }
  0xd9   : > { %569 = vst [vmem:[%s1217_s27 + $0x48] sm:$0xff] %v553_v43 }
  0xda   : > { %573 = vst [vmem:[%s1217_s27 + $0x68] sm:$0xff] %v557_v44 }
  0xdb   : > { %562 = vst [vmem:[%s1217_s27 + $0x10] sm:$0xff] %v546_v45 }
  0xdc   : > { %v458_v47 = vpop.f32.mrf.mxu2  ;;  %v468_v48 = vpop.f32.mrf.mxu3  ;;  %566 = vst [vmem:[%s1217_s27 + $0x30] sm:$0xff] %v550_v46 }
  0xdd   : > { %v440_v49 = vpop.f32.mrf.mxu0  ;;  %v450_v50 = vpop.f32.mrf.mxu1  ;;  %v538_v51 = vadd.f32 %v1212_v16, %v458_v47  ;;  %v542_v52 = vadd.f32 %v1212_v16, %v468_v48 }
  0xde   : > { %v531_v53 = vadd.f32 %v1212_v16, %v440_v49  ;;  %v535_v54 = vadd.f32 %v1212_v16, %v450_v50 }
  0xdf   : > { %v554_v55 = vmax.f32 %v538_v51, 0.0  ;;  %v558_v56 = vmax.f32 %v542_v52, 0.0 }
  0xe0   : > { %v547_v57 = vmax.f32 %v531_v53, 0.0  ;;  %v551_v58 = vmax.f32 %v535_v54, 0.0 }
  0xe1   : > { %570 = vst [vmem:[%s1217_s27 + $0x50] sm:$0xff] %v554_v55 }
  0xe2   : > { %574 = vst [vmem:[%s1217_s27 + $0x70] sm:$0xff] %v558_v56 }
  0xe3   : > { %563 = vst [vmem:[%s1217_s27 + $0x18] sm:$0xff] %v547_v57 }
  0xe4   : > { %v460_v59 = vpop.f32.mrf.mxu2  ;;  %v470_v60 = vpop.f32.mrf.mxu3  ;;  %567 = vst [vmem:[%s1217_s27 + $0x38] sm:$0xff] %v551_v58 }
  0xe5   : > { %v539_v61 = vadd.f32 %v1212_v16, %v460_v59  ;;  %v543_v62 = vadd.f32 %v1212_v16, %v470_v60 }
  0xe7   : > { %v555_v63 = vmax.f32 %v539_v61, 0.0  ;;  %v559_v0 = vmax.f32 %v543_v62, 0.0 }
  0xe9   : > { %571 = vst [vmem:[%s1217_s27 + $0x58] sm:$0xff] %v555_v63 }
  0xea   : > { %575 = vst [vmem:[%s1217_s27 + $0x78] sm:$0xff] %v559_v0 }
  0xeb   : > { %997 = shalt.err (!%p994_p12)
}
  0xec   : > { %s1061_s6 = smov 128   ;;  %s1062_s1 = smov 8  }
  0xed   : > { %837 = dma.vmem_to_hbm [thread:$0]  (%p1164_p3), %s591_s24, 2048, %s593_s15, %s577_s25, %s1061_s6, %s1061_s6, %s1062_s1  }
  0xee PF: > { %p854_p13 = scmp.ge.s32.totalorder %s1056_s17, 2  ;;  %s607_s20 = sand.u32 1, %s1036_s12  }
  0xef   : > { %s608_s22 = scalar_lea.sflag [#allocation4], %s607_s20 }
  0xf0   : > { %p848_p0 = pnand %p854_p13, %p1132_p6 }
  0xf2   : > { %p849_p5 = pneg %p848_p0 }
  0xf4   : > { %1031 = dma.done.wait (%p849_p5), %s608_s22, 2048  }
  0xf5   : > { %1033 = vsyncadd (%p849_p5), %s608_s22, 4294965248  ;;  %s20_s17 = sadd.s32 1, %s1056_s17   ;;  %s1302_s12 = smov %s1040_s13 }
  0xf6   : > { %p17_p7 = scmp.ge.s32.totalorder %s20_s17, 6   ;;  %s1303_s13 = smov %s1044_s14 }
  0xf7   : > { %s1304_s14 = smov %s1173_s18  ;;  %s1305_s15 = smov %s1052_s16 }
  0xf8   : > { %s1306_s16 = smov %s1308_s5  ;;  %19 = sbr.rel (!%p17_p7) target bundleno = 9 (0x9), region = 93 }
  0xfd   :  { %614 = vsyncpa [#allocation3], 1 }
  0xfe   :  { %616 = vsyncpa [#allocation3 + $0x1], 1 }
  0xff   :  { %617 = vsyncpa [#allocation6], 1 }
 0x100   :  { %618 = vsyncpa [#allocation4], 1 }
 0x101   :  { %620 = vsyncpa [#allocation4 + $0x1], 1 }

</bundles_post_ra>
